<compile_context>
chip_gen: v5e
topology: v5e:2x2
jax: 0.10.0
libtpu: 0.0.40
codegen_flags: <defaults>
</compile_context>

<pallas_src>
import functools

import jax
import jax.numpy as jnp
from jax.experimental import pallas as pl
from jax.experimental.pallas import tpu as pltpu

LANE = 128            # lane width / channel padding
TM = 256              # row (target-node) tile  -- "parallel" grid axis
TK = 512              # column (source-node) tile -- "arbitrary" grid axis
NEG_SLOPE = 0.2

assert TK % TM == 0   # n_pad is rounded to TK, giving >=2 row tiles (v7x megacore)


def _round_up(x, m):
    return ((x + m - 1) // m) * m


def _vmem_capacity_bytes():
    try:
        info = pltpu.get_tpu_info()
        cap = int(getattr(info, "vmem_capacity_bytes", 0))
        if cap > 0:
            return cap
    except Exception:
        pass
    return 64 * 1024 * 1024          # conservative default (v7x-sized)


def _vmem_limit_bytes(cap):
    # ~96-100 MiB on v5e/v6e (128 MiB VMEM), ~48 MiB on v7x (64 MiB VMEM).
    return int(min(cap * 3 // 4, 100 * 1024 * 1024))


# ---------------------------------------------------------------------------
# Kernel 1: linear projection + per-node attention logits (hoisted prologue).
# ---------------------------------------------------------------------------
def _gat_proj_kernel(x_ref, w_ref, asrc_ref, adst_ref,
                     h_ref, asrc_o_ref, adst_o_ref):
    h = jnp.dot(x_ref[...], w_ref[...], preferred_element_type=jnp.float32)
    h_ref[...] = h.astype(h_ref.dtype)                  # bf16 stream for aggregation
    asrc_o_ref[...] = jnp.sum(h * asrc_ref[...], axis=-1, keepdims=True)  # f32
    adst_o_ref[...] = jnp.sum(h * adst_ref[...], axis=-1, keepdims=True)  # f32


def gat_project(x_pad, w_pad, att_src_pad, att_dst_pad, *, vmem_limit):
    n_pad, f_pad = x_pad.shape
    c_pad = w_pad.shape[1]
    grid = (n_pad // TM,)
    return pl.pallas_call(
        _gat_proj_kernel,
        out_shape=(jax.ShapeDtypeStruct((n_pad, c_pad), jnp.bfloat16),
                   jax.ShapeDtypeStruct((n_pad, 1), jnp.float32),
                   jax.ShapeDtypeStruct((n_pad, 1), jnp.float32)),
        grid_spec=pltpu.PrefetchScalarGridSpec(
            num_scalar_prefetch=0, grid=grid,
            in_specs=[pl.BlockSpec((TM, f_pad), lambda i: (i, 0)),
                      pl.BlockSpec((f_pad, c_pad), lambda i: (0, 0)),
                      pl.BlockSpec((1, c_pad), lambda i: (0, 0)),
                      pl.BlockSpec((1, c_pad), lambda i: (0, 0))],
            out_specs=(pl.BlockSpec((TM, c_pad), lambda i: (i, 0)),
                       pl.BlockSpec((TM, 1), lambda i: (i, 0)),
                       pl.BlockSpec((TM, 1), lambda i: (i, 0)))),
        compiler_params=pltpu.CompilerParams(
            dimension_semantics=("parallel",),
            vmem_limit_bytes=vmem_limit),
    )(x_pad, w_pad, att_src_pad, att_dst_pad)


# ---------------------------------------------------------------------------
# Kernel 2: masked-softmax attention + aggregation (online softmax,
# block-sparse column schedule via scalar prefetch).
# ---------------------------------------------------------------------------
def _gat_attn_kernel(ktab_ref, cnt_ref, adst_ref, asrc_ref, adj_ref, h_ref,
                     bias_ref, out_ref, m_sc, l_sc, acc_sc,
                     *, h_resident, apply_relu):
    i = pl.program_id(0)
    k = pl.program_id(1)

    @pl.when(k == 0)
    def _():
        m_sc[...] = jnp.full_like(m_sc, -jnp.inf)
        l_sc[...] = jnp.zeros_like(l_sc)
        acc_sc[...] = jnp.zeros_like(acc_sc)

    # Only do work for column tiles that actually contain edges for this row
    # tile (the index map repeats the last useful block for k >= cnt, so the
    # skipped steps also incur no DMA traffic).
    @pl.when(k < cnt_ref[i])
    def _():
        if h_resident:
            off = pl.multiple_of(ktab_ref[i, k] * TK, TK)
            h_tile = h_ref[pl.ds(off, TK), :]
        else:
            h_tile = h_ref[...]

        adj_f = adj_ref[...].astype(jnp.float32)            # {0, 1}
        # e[i, j] = leaky_relu(a_dst[i] + a_src[j]); non-edges pushed to -1e30.
        e = adst_ref[...] + asrc_ref[...]                    # [TM,1]+[1,TK]
        e = jnp.maximum(e, NEG_SLOPE * e)                    # leaky_relu
        e = e * adj_f + (adj_f - 1.0) * jnp.float32(1e30)

        # online (streaming) softmax update
        m_prev = m_sc[...]
        m_new = jnp.maximum(m_prev, jnp.max(e, axis=-1, keepdims=True))
        scale = jnp.exp(m_prev - m_new)
        p = jnp.exp(e - m_new) * adj_f                       # hard-mask non-edges
        l_sc[...] = scale * l_sc[...] + jnp.sum(p, axis=-1, keepdims=True)
        acc_sc[...] = scale * acc_sc[...] + jnp.dot(
            p.astype(h_tile.dtype), h_tile, preferred_element_type=jnp.float32)
        m_sc[...] = m_new

    @pl.when(k == pl.num_programs(1) - 1)
    def _():
        inv_l = pl.reciprocal(l_sc[...], approx=False)       # exact: denom accuracy
        out = acc_sc[...] * inv_l + bias_ref[...]
        if apply_relu:
            out = jnp.maximum(out, 0.0)
        out_ref[...] = out.astype(out_ref.dtype)


def gat_aggregate(adj_pad, ktab, cnt, h_pad, a_src, a_dst, bias_pad,
                  *, apply_relu, vmem_cap, vmem_limit):
    n_pad = adj_pad.shape[0]
    c_pad = h_pad.shape[1]
    ni, nk = n_pad // TM, n_pad // TK
    a_src_row = a_src.reshape(1, n_pad)          # [N,1] -> [1,N] (tiny XLA copy)

    # Keep h fully VMEM-resident across the reduction axis when it fits a
    # per-generation budget (~1/4 of VMEM, x2 for buffering); else tile by TK.
    h_resident = (2 * n_pad * c_pad * 2) <= (vmem_cap // 4)
    if h_resident:
        h_spec = pl.BlockSpec((n_pad, c_pad), lambda i, k, kt, ct: (0, 0))
    else:
        h_spec = pl.BlockSpec((TK, c_pad), lambda i, k, kt, ct: (kt[i, k], 0))

    kernel = functools.partial(_gat_attn_kernel,
                               h_resident=h_resident, apply_relu=apply_relu)
    cost = pl.CostEstimate(
        flops=2 * n_pad * n_pad * c_pad + 8 * n_pad * n_pad,
        transcendentals=n_pad * n_pad,
        bytes_accessed=(n_pad * n_pad                 # int8 adj (upper bound)
                        + 2 * n_pad * c_pad * 2       # bf16 h
                        + n_pad * c_pad * 4))         # f32 output
    return pl.pallas_call(
        kernel,
        out_shape=jax.ShapeDtypeStruct((n_pad, c_pad), jnp.float32),
        grid_spec=pltpu.PrefetchScalarGridSpec(
            num_scalar_prefetch=2, grid=(ni, nk),
            in_specs=[pl.BlockSpec((TM, 1), lambda i, k, kt, ct: (i, 0)),        # a_dst
                      pl.BlockSpec((1, TK), lambda i, k, kt, ct: (0, kt[i, k])),  # a_src
                      pl.BlockSpec((TM, TK), lambda i, k, kt, ct: (i, kt[i, k])),  # adj int8
                      h_spec,                                                     # h bf16
                      pl.BlockSpec((1, c_pad), lambda i, k, kt, ct: (0, 0))],     # bias
            out_specs=pl.BlockSpec((TM, c_pad), lambda i, k, kt, ct: (i, 0)),
            scratch_shapes=[pltpu.VMEM((TM, 1), jnp.float32),      # running max
                            pltpu.VMEM((TM, 1), jnp.float32),      # running denom
                            pltpu.VMEM((TM, c_pad), jnp.float32)]),  # accumulator
        compiler_params=pltpu.CompilerParams(
            dimension_semantics=("parallel", "arbitrary"),
            vmem_limit_bytes=vmem_limit),
        cost_estimate=cost,
    )(ktab, cnt, a_dst, a_src_row, adj_pad, h_pad, bias_pad)


# ---------------------------------------------------------------------------
# Block-sparse schedule + layer / model glue
# ---------------------------------------------------------------------------
def build_block_schedule(adj_pad):
    """Per row tile: indices of nonzero column tiles (ascending, padded with
    repeats of the last valid index so skipped steps re-use the same block)."""
    n_pad = adj_pad.shape[0]
    ni, nk = n_pad // TM, n_pad // TK
    blocks = adj_pad.reshape(ni, TM, nk, TK)
    nz = jnp.any(blocks != 0, axis=(1, 3))                       # [ni, nk] bool
    cnt = jnp.sum(nz, axis=1).astype(jnp.int32)                  # >= 1 (self-loops)
    order = jnp.argsort(1 - nz.astype(jnp.int32), axis=1).astype(jnp.int32)
    last = jnp.take_along_axis(order, jnp.maximum(cnt - 1, 0)[:, None], axis=1)
    pos = jnp.arange(nk, dtype=jnp.int32)[None, :]
    ktab = jnp.where(pos < cnt[:, None], order, last).astype(jnp.int32)
    return ktab, cnt


def build_adj(edge_index, n):
    """adj[i, j] = 1 iff there is an edge j -> i (plus self-loops), int8."""
    src, dst = edge_index[0], edge_index[1]
    adj = jnp.zeros((n, n), jnp.int8)
    adj = adj.at[dst, src].set(1)
    idx = jnp.arange(n)
    adj = adj.at[idx, idx].set(1)   # self-loops for real AND padded nodes
    return adj


def gat_layer(x_pad, adj_pad, ktab, cnt, w, att_src, att_dst, bias,
              *, apply_relu, vmem_cap, vmem_limit):
    f, c = w.shape
    f_pad = x_pad.shape[1]
    c_pad = _round_up(c, LANE)
    w_pad = jnp.zeros((f_pad, c_pad), jnp.float32).at[:f, :c].set(w)
    asrc_pad = jnp.zeros((1, c_pad), jnp.float32).at[:, :c].set(att_src)
    adst_pad = jnp.zeros((1, c_pad), jnp.float32).at[:, :c].set(att_dst)
    bias_pad = jnp.zeros((1, c_pad), jnp.float32).at[:, :c].set(bias)
    h_pad, a_src, a_dst = gat_project(x_pad, w_pad, asrc_pad, adst_pad,
                                      vmem_limit=vmem_limit)
    return gat_aggregate(adj_pad, ktab, cnt, h_pad, a_src, a_dst, bias_pad,
                         apply_relu=apply_relu, vmem_cap=vmem_cap,
                         vmem_limit=vmem_limit)


def init_gat_params(key, num_features, hidden_channels, num_classes):
    ks = jax.random.split(key, 6)

    def glorot(k, shape):
        fan_in, fan_out = shape
        limit = (6.0 / (fan_in + fan_out)) ** 0.5
        return jax.random.uniform(k, shape, jnp.float32, -limit, limit)

    return {
        "w1": glorot(ks[0], (num_features, hidden_channels)),
        "att_src1": glorot(ks[1], (1, hidden_channels)),
        "att_dst1": glorot(ks[2], (1, hidden_channels)),
        "b1": jnp.zeros((1, hidden_channels), jnp.float32),
        "w2": glorot(ks[3], (hidden_channels, num_classes)),
        "att_src2": glorot(ks[4], (1, num_classes)),
        "att_dst2": glorot(ks[5], (1, num_classes)),
        "b2": jnp.zeros((1, num_classes), jnp.float32),
    }


def gat_forward(params, x, edge_index, num_nodes):
    # n_pad is a multiple of TK (and TM), guaranteeing >=2 row tiles.
    n_pad = _round_up(num_nodes, TK)
    f = x.shape[1]
    f_pad = _round_up(f, LANE)
    x_pad = jnp.zeros((n_pad, f_pad), jnp.float32).at[:num_nodes, :f].set(x)
    adj_pad = build_adj(edge_index, n_pad)
    ktab, cnt = build_block_schedule(adj_pad)

    vmem_cap = _vmem_capacity_bytes()
    vmem_limit = _vmem_limit_bytes(vmem_cap)

    # conv1 + fused ReLU
    h = gat_layer(x_pad, adj_pad, ktab, cnt, params["w1"], params["att_src1"],
                  params["att_dst1"], params["b1"], apply_relu=True,
                  vmem_cap=vmem_cap, vmem_limit=vmem_limit)
    # F.dropout(p=0.5) -> identity at inference
    # conv2
    out = gat_layer(h, adj_pad, ktab, cnt, params["w2"], params["att_src2"],
                    params["att_dst2"], params["b2"], apply_relu=False,
                    vmem_cap=vmem_cap, vmem_limit=vmem_limit)
    num_classes = params["w2"].shape[1]
    return out[:num_nodes, :num_classes]


# ---------------------------------------------------------------------------
# Pure-JAX reference (for a correctness sanity check)
# ---------------------------------------------------------------------------
def gat_reference(params, x, edge_index, num_nodes):
    adj = build_adj(edge_index, num_nodes) != 0

    def layer(xx, w, a_s, a_d, b, relu):
        h = xx @ w
        s = jnp.sum(h * a_s, axis=-1, keepdims=True)
        d = jnp.sum(h * a_d, axis=-1, keepdims=True)
        e = d + s.T
        e = jnp.where(e > 0, e, NEG_SLOPE * e)
        e = jnp.where(adj, e, -jnp.inf)
        alpha = jax.nn.softmax(e, axis=-1)
        out = alpha @ h + b
        return jnp.maximum(out, 0.0) if relu else out

    h = layer(x, params["w1"], params["att_src1"], params["att_dst1"],
              params["b1"], True)
    return layer(h, params["w2"], params["att_src2"], params["att_dst2"],
                 params["b2"], False)


if __name__ == "__main__":
    key = jax.random.PRNGKey(0)
    kx, kp = jax.random.split(key, 2)

    num_nodes = 16
    num_features = 8
    hidden_channels = 16
    num_classes = 4

    # deterministic node features
    x = jax.random.normal(kx, (num_nodes, num_features), jnp.float32)

    # deterministic graph: bidirectional ring over the nodes
    src = jnp.arange(num_nodes)
    dst = (src + 1) % num_nodes
    edge_index = jnp.stack(
        [jnp.concatenate([src, dst]), jnp.concatenate([dst, src])], axis=0
    )  # [2, 2*N]

    params = init_gat_params(kp, num_features, hidden_channels, num_classes)

    out = gat_forward(params, x, edge_index, num_nodes)
    out = jax.block_until_ready(out)
    assert out.shape == (num_nodes, num_classes)
    assert bool(jnp.all(jnp.isfinite(out)))

    ref = gat_reference(params, x, edge_index, num_nodes)
    assert bool(jnp.allclose(out, ref, rtol=3e-2, atol=3e-2)), (
        float(jnp.max(jnp.abs(out - ref))))

    print("KERNEL_OK")
</pallas_src>

<mosaic_0001>
module attributes {stable_mosaic.version = 11 : i64} {
  func.func @_gat_proj_kernel(%arg0: i32, %arg1: memref<256x128xf32, #tpu.memory_space<vmem>>, %arg2: memref<128x128xf32, #tpu.memory_space<vmem>>, %arg3: memref<1x128xf32, #tpu.memory_space<vmem>>, %arg4: memref<1x128xf32, #tpu.memory_space<vmem>>, %arg5: memref<256x128xbf16, #tpu.memory_space<vmem>>, %arg6: memref<256x1xf32, #tpu.memory_space<vmem>>, %arg7: memref<256x1xf32, #tpu.memory_space<vmem>>) attributes {dimension_semantics = [#tpu.dimension_semantics<parallel>], iteration_bounds = array<i64: 2>, scalar_prefetch = 0 : i64, scratch_operands = 0 : i64, tpu.core_type = #tpu.core_type<tc>, window_params = [{transform_indices = @transform_0, window_bounds = array<i64: 256, 128>}, {pipeline_mode = #tpu.pipeline_mode<synchronous>, transform_indices = @transform_1, window_bounds = array<i64: 128, 128>}, {pipeline_mode = #tpu.pipeline_mode<synchronous>, transform_indices = @transform_2, window_bounds = array<i64: 1, 128>}, {pipeline_mode = #tpu.pipeline_mode<synchronous>, transform_indices = @transform_3, window_bounds = array<i64: 1, 128>}, {transform_indices = @transform_4, window_bounds = array<i64: 256, 128>}, {transform_indices = @transform_5, window_bounds = array<i64: 256, 1>}, {transform_indices = @transform_6, window_bounds = array<i64: 256, 1>}]} {
    %c0 = arith.constant 0 : index
    %c0_0 = arith.constant 0 : index
    %0 = vector.load %arg1[%c0, %c0_0] : memref<256x128xf32, #tpu.memory_space<vmem>>, vector<256x128xf32>
    %c0_1 = arith.constant 0 : index
    %c0_2 = arith.constant 0 : index
    %1 = vector.load %arg2[%c0_1, %c0_2] : memref<128x128xf32, #tpu.memory_space<vmem>>, vector<128x128xf32>
    %cst = arith.constant dense<0.000000e+00> : vector<256x128xf32>
    %2 = tpu.matmul %0, %1, %cst {dimension_numbers = #tpu.dot_dimension_numbers<[1], [0], [0], [1], [0, 0, 1, 1], [], []>} : vector<256x128xf32>, vector<128x128xf32>, vector<256x128xf32> -> vector<256x128xf32>
    %3 = arith.truncf %2 : vector<256x128xf32> to vector<256x128xbf16>
    %c0_3 = arith.constant 0 : index
    %c0_4 = arith.constant 0 : index
    %4 = vector.load %arg5[%c0_3, %c0_4] : memref<256x128xbf16, #tpu.memory_space<vmem>>, vector<256x128xbf16>
    tpu.vector_store %arg5[%c0_3, %c0_4], %3 {strides = array<i32>} : memref<256x128xbf16, #tpu.memory_space<vmem>>, vector<256x128xbf16>,
    %c0_5 = arith.constant 0 : index
    %c0_6 = arith.constant 0 : index
    %5 = vector.load %arg3[%c0_5, %c0_6] : memref<1x128xf32, #tpu.memory_space<vmem>>, vector<1x128xf32>
    %6 = vector.broadcast %5 : vector<1x128xf32> to vector<256x128xf32>
    %7 = arith.mulf %2, %6 : vector<256x128xf32>
    %cst_7 = arith.constant dense<0.000000e+00> : vector<256xf32>
    %8 = vector.multi_reduction <add>, %7, %cst_7 [1] : vector<256x128xf32> to vector<256xf32>
    %9 = vector.shape_cast %8 : vector<256xf32> to vector<256x1xf32>
    %c0_8 = arith.constant 0 : index
    %c0_9 = arith.constant 0 : index
    %10 = vector.load %arg6[%c0_8, %c0_9] : memref<256x1xf32, #tpu.memory_space<vmem>>, vector<256x1xf32>
    tpu.vector_store %arg6[%c0_8, %c0_9], %9 {strides = array<i32>} : memref<256x1xf32, #tpu.memory_space<vmem>>, vector<256x1xf32>,
    %c0_10 = arith.constant 0 : index
    %c0_11 = arith.constant 0 : index
    %11 = vector.load %arg4[%c0_10, %c0_11] : memref<1x128xf32, #tpu.memory_space<vmem>>, vector<1x128xf32>
    %12 = vector.broadcast %11 : vector<1x128xf32> to vector<256x128xf32>
    %13 = arith.mulf %2, %12 : vector<256x128xf32>
    %cst_12 = arith.constant dense<0.000000e+00> : vector<256xf32>
    %14 = vector.multi_reduction <add>, %13, %cst_12 [1] : vector<256x128xf32> to vector<256xf32>
    %15 = vector.shape_cast %14 : vector<256xf32> to vector<256x1xf32>
    %c0_13 = arith.constant 0 : index
    %c0_14 = arith.constant 0 : index
    %16 = vector.load %arg7[%c0_13, %c0_14] : memref<256x1xf32, #tpu.memory_space<vmem>>, vector<256x1xf32>
    tpu.vector_store %arg7[%c0_13, %c0_14], %15 {strides = array<i32>} : memref<256x1xf32, #tpu.memory_space<vmem>>, vector<256x1xf32>,
    return
  }
  func.func @transform_0(%arg0: i32) -> (i32, i32) {
    %c0_i32 = arith.constant 0 : i32
    %c0_i32_0 = arith.constant 0 : i32
    return %arg0, %c0_i32 : i32, i32
  }
  func.func @transform_1(%arg0: i32) -> (i32, i32) {
    %c0_i32 = arith.constant 0 : i32
    %c0_i32_0 = arith.constant 0 : i32
    %c0_i32_1 = arith.constant 0 : i32
    return %c0_i32, %c0_i32_0 : i32, i32
  }
  func.func @transform_2(%arg0: i32) -> (i32, i32) {
    %c0_i32 = arith.constant 0 : i32
    %c0_i32_0 = arith.constant 0 : i32
    %c0_i32_1 = arith.constant 0 : i32
    return %c0_i32, %c0_i32_0 : i32, i32
  }
  func.func @transform_3(%arg0: i32) -> (i32, i32) {
    %c0_i32 = arith.constant 0 : i32
    %c0_i32_0 = arith.constant 0 : i32
    %c0_i32_1 = arith.constant 0 : i32
    return %c0_i32, %c0_i32_0 : i32, i32
  }
  func.func @transform_4(%arg0: i32) -> (i32, i32) {
    %c0_i32 = arith.constant 0 : i32
    %c0_i32_0 = arith.constant 0 : i32
    return %arg0, %c0_i32 : i32, i32
  }
  func.func @transform_5(%arg0: i32) -> (i32, i32) {
    %c0_i32 = arith.constant 0 : i32
    %c0_i32_0 = arith.constant 0 : i32
    return %arg0, %c0_i32 : i32, i32
  }
  func.func @transform_6(%arg0: i32) -> (i32, i32) {
    %c0_i32 = arith.constant 0 : i32
    %c0_i32_0 = arith.constant 0 : i32
    return %arg0, %c0_i32 : i32, i32
  }
}

</mosaic_0001>

<bundles_post_ra>
// kernel: tpu_custom_call.1
= control target key start
LH: loop header
LB: loop body
LE: loop exit
PB: predicated region body
PF: predicated region fallthrough
CT: control target
= control target key end

     0   :  { %12 = vsyncpa [#allocation3], 0  ;;  %s1841_s0 = inlined_call_operand.hbm [shape: f32[512,128], index: 0, kind: input, shape index: {}]   ;;  %s1842_s1 = inlined_call_operand.hbm [shape: f32[128,128], index: 1, kind: input, shape index: {}]   ;;  %s1843_s2 = inlined_call_operand.vmem [shape: f32[1,128], index: 2, kind: input, shape index: {}]   ;;  %s1844_s3 = inlined_call_operand.vmem [shape: f32[1,128], index: 3, kind: input, shape index: {}]   ;;  %s1845_s4 = inlined_call_operand.hbm [shape: bf16[512,128], index: 4, kind: output, shape index: {0}]   ;;  %s1846_s5 = inlined_call_operand.vmem [shape: f32[512,1], index: 5, kind: output, shape index: {1}]   ;;  %s1847_s6 = inlined_call_operand.vmem [shape: f32[512,1], index: 6, kind: output, shape index: {2}]  }
   0x1   :  { %14 = vsyncpa [#allocation3 + $0x1], 0 }
   0x2   :  { %15 = vsyncpa [#allocation6], 0 }
   0x3   :  { %16 = vsyncpa [#allocation4], 0 }
   0x4   :  { %18 = vsyncpa [#allocation4 + $0x1], 0  ;;  %s1375_s21 = smov 0   ;;  %s1377_s22 = smov 0  }
   0x5   :  { %s1379_s23 = smov 0   ;;  %s1381_s24 = smov 0  }
   0x6 LB: > { %s1396_s25 = sadd.s32 4294967295, %s1333_s24   ;;  %s975_s26 = sadd.s32 4294967294, %s1333_s24   ;;  %s1333_s24 = sphi %s1381_s24, %s1861_s24   ;;  %s1329_s23 = sphi %s1379_s23, %s1860_s23   ;;  %s1325_s22 = sphi %s1377_s22, %s1859_s22   ;;  %s1321_s21 = sphi %s1375_s21, %s1858_s21  }
   0x7   : > { %p44_p0 = scmp.ne.s32.totalorder %s1325_s22, %s1321_s21  ;;  %p45_p1 = scmp.eq.s32.totalorder %s1396_s25, 0 }
   0x8   : > { %p131_p2 = scmp.eq.s32.totalorder %s1396_s25, 1  ;;  %p137_p3 = scmp.eq.s32.totalorder %s975_s26, 1 }
   0x9   : > { %p1405_p4 = por %p45_p1, %p44_p0  ;;  %p976_p5 = scmp.ge.s32.totalorder %s1333_s24, 1 }
   0xa   : > { %p1410_p6 = por %p137_p3, %p44_p0  ;;  %p196_p7 = scmp.lt.s32.totalorder %s1333_s24, 3 }
   0xb   : > { %s207_s7 = sshll.u32 %s1842_s1, 4  ;;  %s1335_s9 = smov [#allocation5]   ;;  %s208_s7 = int_to_ptr.hbm [resolvable:$true] %s207_s7 }
   0xc   : > { %p1418_p8 = pnand %p976_p5, %p196_p7  ;;  %s209_s10 = sshll.u32 %s1335_s9, 4  ;;  %s210_s10 = int_to_ptr.vmem [resolvable:$true] %s209_s10 }
   0xd   : > { %s1428_s11 = sadd.s32 1, %s1333_s24   ;;  %s1848_s12 = smov 128  }
   0xe   : > { %p1148_p9 = pneg %p1418_p8  ;;  %s1849_s13 = smov 8  }
   0xf   : > { %s28_s14 = ssub.s32 %s1333_s24, %s1428_s11  ;;  %s31_s15 = sadd.s32 1, %s1329_s23 }
  0x10   : > { %p1149_p10 = pnand %p1148_p9, %p45_p1  ;;  %p29_p12 = scmp.eq.s32.totalorder %s28_s14, 0 }
  0x11   : > { %p38_p13 = scmp.ne.s32.totalorder %s1329_s23, %s1325_s22  ;;  %p39_p0 = scmp.eq.s32.totalorder %s1333_s24, 0 }
  0x12   : > { %1151 = dma.hbm_to_vmem [thread:$0]  (!%p1149_p10), %s208_s7, 2048, %s210_s10, [#allocation6], %s1848_s12, %s1848_s12, %s1849_s13  }
  0x13   : > { %s1440_s16 = scalar_select %p29_p12, %s1329_s23, %s31_s15  }
  0x14   : > { %p1444_p3 = por %p131_p2, %p38_p13  ;;  %p1161_p5 = scmp.lt.s32.totalorder %s1333_s24, 2 }
  0x15   : > { %s229_s18 = sand.u32 1, %s1329_s23   ;;  %s995_s19 = sshll.u32 %s1333_s24, 8 }
  0x16   : > { %p40_p7 = por %p39_p0, %p38_p13  ;;  %s979_s20 = sshll.u32 %s229_s18, 8 }
  0x17   : > { %s238_s30 = scalar_lea.hbm %s1841_s0, %s995_s19  ;;  %s233_s9 = scalar_lea.vmem [#allocation2], %s979_s20 }
  0x18   : > { %s239_s7 = sshll.u32 %s238_s30, 4  ;;  %s241_s10 = sshll.u32 %s233_s9, 4  ;;  %s240_s7 = int_to_ptr.hbm [resolvable:$true] %s239_s7  ;;  %s242_s10 = int_to_ptr.vmem [resolvable:$true] %s241_s10 }
  0x19   : > { %p1454_p9 = pnand %p1161_p5, %p40_p7  ;;  %s230_s15 = scalar_lea.sflag [#allocation3], %s229_s18 }
  0x1a   : > { %s1233_s12 = sshra.s32 %s240_s7, 4  ;;  %s1240_s20 = scalar_lea.hbm %s1841_s0, 512  ;;  %s1234_s12 = int_to_ptr.hbm [resolvable:$true] %s1233_s12 }
  0x1b   : > { %s1235_s13 = scalar_lea.hbm %s1234_s12, 256  ;;  %p1237_p10 = pneg %p1454_p9 }
  0x1c   : > { %p1236_p2 = scmp.ne.s32.totalorder %s1234_s12, %s1235_s13  ;;  %p1241_p0 = scmp.lt.s32.totalorder %s1234_s12, %s1841_s0 }
  0x1d   : > { %p1242_p5 = scmp.lt.s32.totalorder %s1240_s20, %s1235_s13 }
  0x1e   : > { %p1238_p12 = pnand %p1237_p10, %p1236_p2 }
  0x1f   : > { %p1243_p7 = por %p1242_p5, %p1241_p0 }
  0x20   : > { %p1239_p13 = pneg %p1238_p12 }
  0x22   : > { %p1244_p11 = pnand %p1243_p7, %p1239_p13 }
  0x24   : > { %1247 = shalt.err (!%p1244_p11)
}
  0x25   : > { %s1855_s18 = smov 8   ;;  %s1856_s9 = smov 128  }
  0x26   : > { %1155 = dma.hbm_to_vmem [thread:$0]  (!%p1454_p9), %s240_s7, 4096, %s242_s10, %s230_s15, %s1856_s9, %s1856_s9, %s1855_s18  }
  0x27   : > { %253 = sbr.rel (%p1418_p8) target bundleno = 492 (0x1ec), region = 36  ;;  %s1474_s19 = sand.u32 (!%p1418_p8), 1, %s1325_s22  }
  0x28   : > { %s983_s12 = sshll.u32 (!%p1418_p8), %s1474_s19, 8  ;;  %s256_s13 = scalar_lea.sflag (!%p1418_p8), [#allocation3], %s1474_s19 }
  0x29   : > { %s1478_s26 = scalar_lea.vmem (!%p1418_p8), [#allocation2], %s983_s12 }
  0x2c   : > { %1308 = dma.done.wait (%p1405_p4), %s256_s13, 4096  }
  0x2d   : > { %1310 = vsyncadd (%p1405_p4), %s256_s13, 4294963200 }
  0x2e   : > { %1312 = dma.done.wait (%p45_p1), [#allocation6], 2048  }
  0x2f   : > { %1314 = vsyncadd (%p45_p1), [#allocation6], 4294965248  ;;  %v365_v0 = vld [vmem:[#allocation5 + $0x78] sm:$0xff]  ;;  %v364_v1 = vld [vmem:[#allocation5 + $0x70] sm:$0xff]  ;;  %s985_s14 = sshll.u32 %s1474_s19, 7  ;;  %s986_s20 = sshll.u32 %s1396_s25, 5 }
  0x30   : > { %366 = vmatpush.msra.mxu0 %v365_v0  ;;  %1092 = vmatpush.msra.mxu1 %v365_v0  ;;  %v363_v2 = vld [vmem:[#allocation5 + $0x68] sm:$0xff]  ;;  %v362_v3 = vld [vmem:[#allocation5 + $0x60] sm:$0xff]  ;;  %v361_v4 = vld [vmem:[#allocation5 + $0x58] sm:$0xff]  ;;  %s1537_s15 = scalar_lea.vmem [#allocation7], %s985_s14  ;;  %p307_p1 = scmp.lt.s32.totalorder %s986_s20, 63  ;;  %vm643_vm0 = vcmask 7168  }
  0x31   : > { %1094 = vmatpush.msra.mxu3 %v365_v0  ;;  %1093 = vmatpush.msra.mxu2 %v365_v0  ;;  %v360_v5 = vld [vmem:[#allocation5 + $0x50] sm:$0xff]  ;;  %v359_v6 = vld [vmem:[#allocation5 + $0x48] sm:$0xff]  ;;  %v358_v7 = vld [vmem:[#allocation5 + $0x40] sm:$0xff]  ;;  %s996_s27 = sshll.u32 %s1396_s25, 7  ;;  %s831_s14 = sshll.u32 %s1537_s15, 4  ;;  %s832_s14 = int_to_ptr.vmem [resolvable:$true] %s831_s14 }
  0x32   : > { %367 = vmatpush.msra.mxu0 %v364_v1  ;;  %1095 = vmatpush.msra.mxu1 %v364_v1  ;;  %v357_v8 = vld [vmem:[#allocation5 + $0x38] sm:$0xff]  ;;  %v356_v9 = vld [vmem:[#allocation5 + $0x30] sm:$0xff]  ;;  %v355_v10 = vld [vmem:[#allocation5 + $0x28] sm:$0xff]  ;;  %s1863_s20 = smov (!%p307_p1, %s986_s20), 63  ;;  %s830_s10 = scalar_lea.hbm %s1845_s4, %s996_s27 }
  0x33   : > { %1097 = vmatpush.msra.mxu3 %v364_v1  ;;  %1096 = vmatpush.msra.mxu2 %v364_v1  ;;  %v354_v11 = vld [vmem:[#allocation5 + $0x20] sm:$0xff]  ;;  %v353_v12 = vld [vmem:[#allocation5 + $0x18] sm:$0xff]  ;;  %v352_v13 = vld [vmem:[#allocation5 + $0x10] sm:$0xff]  ;;  %s987_s29 = sshll.u32 %s1863_s20, 3  ;;  %s833_s20 = sshll.u32 %s830_s10, 4  ;;  %s834_s20 = int_to_ptr.hbm [resolvable:$true] %s833_s20 }
  0x34   : > { %368 = vmatpush.msra.mxu0 %v363_v2  ;;  %1098 = vmatpush.msra.mxu1 %v363_v2  ;;  %v351_v14 = vld [vmem:[#allocation5 + $0x8] sm:$0xff]  ;;  %v350_v15 = vld [vmem:[#allocation5] sm:$0xff]  ;;  %v320_v24 = vld [vmem:[%s1478_s26 + $0x10] sm:$0xff]  ;;  %s1636_s9 = scalar_lea.vmem %s1846_s5, %s987_s29  ;;  %s809_s25 = scalar_lea.sflag [#allocation4], %s1474_s19 }
  0x35   : > { %1100 = vmatpush.msra.mxu3 %v363_v2  ;;  %1099 = vmatpush.msra.mxu2 %v363_v2  ;;  %v318_v16 = vld [vmem:[%s1478_s26] sm:$0xff]  ;;  %v319_v20 = vld [vmem:[%s1478_s26 + $0x8] sm:$0xff]  ;;  %v344_v25 = vld [vmem:[%s1478_s26 + $0xd0] sm:$0xff]  ;;  %s1283_s12 = scalar_lea.hbm %s1845_s4, 256 }
  0x36   : > { %369 = vmatpush.msra.mxu0 %v362_v3  ;;  %1101 = vmatpush.msra.mxu1 %v362_v3  ;;  %v326_v17 = vld [vmem:[%s1478_s26 + $0x40] sm:$0xff]  ;;  %v327_v21 = vld [vmem:[%s1478_s26 + $0x48] sm:$0xff]  ;;  %v328_v26 = vld [vmem:[%s1478_s26 + $0x50] sm:$0xff] }
  0x37   : > { %1103 = vmatpush.msra.mxu3 %v362_v3  ;;  %1102 = vmatpush.msra.mxu2 %v362_v3  ;;  %v342_v18 = vld [vmem:[%s1478_s26 + $0xc0] sm:$0xff]  ;;  %v343_v22 = vld [vmem:[%s1478_s26 + $0xc8] sm:$0xff]  ;;  %v336_v27 = vld [vmem:[%s1478_s26 + $0x90] sm:$0xff] }
  0x38   : > { %370 = vmatpush.msra.mxu0 %v361_v4  ;;  %1104 = vmatpush.msra.mxu1 %v361_v4  ;;  %v334_v19 = vld [vmem:[%s1478_s26 + $0x80] sm:$0xff]  ;;  %v335_v23 = vld [vmem:[%s1478_s26 + $0x88] sm:$0xff]  ;;  %v321_v28 = vld [vmem:[%s1478_s26 + $0x18] sm:$0xff] }
  0x39   : > { %1106 = vmatpush.msra.mxu3 %v361_v4  ;;  %1105 = vmatpush.msra.mxu2 %v361_v4  ;;  %v345_v29 = vld [vmem:[%s1478_s26 + $0xd8] sm:$0xff]  ;;  %v322_v32 = vld [vmem:[%s1478_s26 + $0x20] sm:$0xff]  ;;  %v323_v36 = vld [vmem:[%s1478_s26 + $0x28] sm:$0xff] }
  0x3a   : > { %371 = vmatpush.msra.mxu0 %v360_v5  ;;  %1107 = vmatpush.msra.mxu1 %v360_v5  ;;  %v329_v30 = vld [vmem:[%s1478_s26 + $0x58] sm:$0xff]  ;;  %v330_v33 = vld [vmem:[%s1478_s26 + $0x60] sm:$0xff]  ;;  %v331_v37 = vld [vmem:[%s1478_s26 + $0x68] sm:$0xff] }
  0x3b   : > { %1109 = vmatpush.msra.mxu3 %v360_v5  ;;  %1108 = vmatpush.msra.mxu2 %v360_v5  ;;  %v337_v31 = vld [vmem:[%s1478_s26 + $0x98] sm:$0xff]  ;;  %v346_v34 = vld [vmem:[%s1478_s26 + $0xe0] sm:$0xff]  ;;  %v347_v38 = vld [vmem:[%s1478_s26 + $0xe8] sm:$0xff] }
  0x3c   : > { %372 = vmatpush.msra.mxu0 %v359_v6  ;;  %1110 = vmatpush.msra.mxu1 %v359_v6  ;;  %v338_v35 = vld [vmem:[%s1478_s26 + $0xa0] sm:$0xff]  ;;  %v339_v39 = vld [vmem:[%s1478_s26 + $0xa8] sm:$0xff]  ;;  %v324_v40 = vld [vmem:[%s1478_s26 + $0x30] sm:$0xff] }
  0x3d   : > { %1112 = vmatpush.msra.mxu3 %v359_v6  ;;  %1111 = vmatpush.msra.mxu2 %v359_v6  ;;  %v332_v41 = vld [vmem:[%s1478_s26 + $0x70] sm:$0xff]  ;;  %v333_v44 = vld [vmem:[%s1478_s26 + $0x78] sm:$0xff]  ;;  %v1523_v48 = vld [vmem:[%s1843_s2] ss:$0 sm:$0xff] }
  0x3e   : > { %373 = vmatpush.msra.mxu0 %v358_v7  ;;  %1113 = vmatpush.msra.mxu1 %v358_v7  ;;  %v348_v42 = vld [vmem:[%s1478_s26 + $0xf0] sm:$0xff]  ;;  %v325_v45 = vld [vmem:[%s1478_s26 + $0x38] sm:$0xff]  ;;  %v1528_v49 = vld [vmem:[%s1844_s3] ss:$0 sm:$0xff] }
  0x3f   : > { %1115 = vmatpush.msra.mxu3 %v358_v7  ;;  %1114 = vmatpush.msra.mxu2 %v358_v7  ;;  %v340_v43 = vld [vmem:[%s1478_s26 + $0xb0] sm:$0xff]  ;;  %v341_v46 = vld [vmem:[%s1478_s26 + $0xb8] sm:$0xff] }
  0x40   : > { %374 = vmatpush.msra.mxu0 %v357_v8  ;;  %1116 = vmatpush.msra.mxu1 %v357_v8  ;;  %v349_v47 = vld [vmem:[%s1478_s26 + $0xf8] sm:$0xff]  ;;  %s1641_s26 = scalar_lea.vmem %s1847_s6, %s987_s29  ;;  %s1277_s29 = sshra.s32 %s834_s20, 4  ;;  %s1278_s29 = int_to_ptr.hbm [resolvable:$true] %s1277_s29 }
  0x41   : > { %1118 = vmatpush.msra.mxu3 %v357_v8  ;;  %1117 = vmatpush.msra.mxu2 %v357_v8  ;;  %p1284_p9 = scmp.lt.s32.totalorder %s1278_s29, %s1845_s4 }
  0x42   : > { %375 = vmatpush.msra.mxu0 %v356_v9  ;;  %1119 = vmatpush.msra.mxu1 %v356_v9 }
  0x43   : > { %1121 = vmatpush.msra.mxu3 %v356_v9  ;;  %1120 = vmatpush.msra.mxu2 %v356_v9 }
  0x44   : > { %376 = vmatpush.msra.mxu0 %v355_v10  ;;  %1122 = vmatpush.msra.mxu1 %v355_v10 }
  0x45   : > { %1124 = vmatpush.msra.mxu3 %v355_v10  ;;  %1123 = vmatpush.msra.mxu2 %v355_v10 }
  0x46   : > { %377 = vmatpush.msra.mxu0 %v354_v11  ;;  %1125 = vmatpush.msra.mxu1 %v354_v11 }
  0x47   : > { %1127 = vmatpush.msra.mxu3 %v354_v11  ;;  %1126 = vmatpush.msra.mxu2 %v354_v11 }
  0x48   : > { %378 = vmatpush.msra.mxu0 %v353_v12  ;;  %1128 = vmatpush.msra.mxu1 %v353_v12 }
  0x49   : > { %1130 = vmatpush.msra.mxu3 %v353_v12  ;;  %1129 = vmatpush.msra.mxu2 %v353_v12 }
  0x4a   : > { %379 = vmatpush.msra.mxu0 %v352_v13  ;;  %1131 = vmatpush.msra.mxu1 %v352_v13 }
  0x4b   : > { %1133 = vmatpush.msra.mxu3 %v352_v13  ;;  %1132 = vmatpush.msra.mxu2 %v352_v13 }
  0x4c   : > { %380 = vmatpush.msra.mxu0 %v351_v14  ;;  %1134 = vmatpush.msra.mxu1 %v351_v14 }
  0x4d   : > { %1136 = vmatpush.msra.mxu3 %v351_v14  ;;  %1135 = vmatpush.msra.mxu2 %v351_v14 }
  0x4e   : > { %381 = vmatpush.msra.mxu0 %v350_v15  ;;  %1137 = vmatpush.msra.mxu1 %v350_v15 }
  0x4f   : > { %1139 = vmatpush.msra.mxu3 %v350_v15  ;;  %382 = vmatmul.f32.vlgmr.msra.gmra.mxu0 %v318_v16 }
  0x50   : > { %406 = vmatmul.f32.vlgmr.msra.gmra.mxu1 %v326_v17  ;;  %454 = vmatmul.f32.vlgmr.msra.gmra.mxu3 %v342_v18 }
  0x51   : > { %1138 = vmatpush.msra.mxu2 %v350_v15 }
  0x52   : > { %430 = vmatmul.f32.vlgmr.msra.gmra.mxu2 %v334_v19 }
  0x57   : > { %385 = vmatmul.f32.gmra.mxu0 %v319_v20 }
  0x58   : > { %409 = vmatmul.f32.gmra.mxu1 %v327_v21  ;;  %457 = vmatmul.f32.gmra.mxu3 %v343_v22 }
  0x5a   : > { %433 = vmatmul.f32.gmra.mxu2 %v335_v23 }
  0x5f   : > { %388 = vmatmul.f32.gmra.mxu0 %v320_v24 }
  0x60   : > { %460 = vmatmul.f32.gmra.mxu3 %v344_v25  ;;  %412 = vmatmul.f32.gmra.mxu1 %v328_v26 }
  0x62   : > { %436 = vmatmul.f32.gmra.mxu2 %v336_v27 }
  0x67   : > { %391 = vmatmul.f32.gmra.mxu0 %v321_v28 }
  0x68   : > { %463 = vmatmul.f32.gmra.mxu3 %v345_v29  ;;  %415 = vmatmul.f32.gmra.mxu1 %v329_v30 }
  0x6a   : > { %439 = vmatmul.f32.gmra.mxu2 %v337_v31 }
  0x6f   : > { %394 = vmatmul.f32.gmra.mxu0 %v322_v32 }
  0x70   : > { %418 = vmatmul.f32.gmra.mxu1 %v330_v33  ;;  %466 = vmatmul.f32.gmra.mxu3 %v346_v34 }
  0x72   : > { %442 = vmatmul.f32.gmra.mxu2 %v338_v35 }
  0x77   : > { %397 = vmatmul.f32.gmra.mxu0 %v323_v36 }
  0x78   : > { %421 = vmatmul.f32.gmra.mxu1 %v331_v37  ;;  %469 = vmatmul.f32.gmra.mxu3 %v347_v38 }
  0x7a   : > { %445 = vmatmul.f32.gmra.mxu2 %v339_v39 }
  0x7f   : > { %400 = vmatmul.f32.gmra.mxu0 %v324_v40 }
  0x80   : > { %424 = vmatmul.f32.gmra.mxu1 %v332_v41  ;;  %472 = vmatmul.f32.gmra.mxu3 %v348_v42 }
  0x82   : > { %448 = vmatmul.f32.gmra.mxu2 %v340_v43 }
  0x87   : > { %403 = vmatmul.f32.gmra.mxu0 %v325_v45 }
  0x88   : > { %427 = vmatmul.f32.gmra.mxu1 %v333_v44  ;;  %475 = vmatmul.f32.gmra.mxu3 %v349_v47 }
  0x8a   : > { %451 = vmatmul.f32.gmra.mxu2 %v341_v46 }
  0xcc   : > { %v383_v50 = vpop.f32.mrf.mxu0 }
  0xcd   : > { %v407_v51 = vpop.f32.mrf.mxu1  ;;  %v547_v52 = vmul.f32 %v1523_v48, %v383_v50  ;;  %v680_v63 = vmul.f32 %v1528_v49, %v383_v50 }
  0xce   : > { %v688_v53 = vmul.f32 %v1528_v49, %v407_v51  ;;  %v555_v54 = vmul.f32 %v1523_v48, %v407_v51 }
  0xcf   : > { %579 = vadd.xlane.f32.xlu0 %v547_v52 }
  0xd0   : > { %728 = vadd.xlane.f32.xlu1 %v688_v53  ;;  %595 = vadd.xlane.f32.xlu2 %v555_v54 }
  0xd3   : > { %v455_v55 = vpop.f32.mrf.mxu3 }
  0xd4   : > { %v386_v56 = vpop.f32.mrf.mxu0  ;;  %v571_v57 = vmul.f32 %v1523_v48, %v455_v55  ;;  %v704_v8 = vmul.f32 %v1528_v49, %v455_v55 }
  0xd5   : > { %v1000_v58 = vpack.c.bf16 %v386_v56, %v383_v50  ;;  %v410_v59 = vpop.f32.mrf.mxu1  ;;  %v431_v60 = vpop.f32.mrf.mxu2  ;;  %v548_v9 = vmul.f32 %v1523_v48, %v386_v56  ;;  %v681_v27 = vmul.f32 %v1528_v49, %v386_v56 }
  0xd6   : > { %v1020_v61 = vpack.c.bf16 %v410_v59, %v407_v51  ;;  %v563_v62 = vmul.f32 %v1523_v48, %v431_v60  ;;  %v696_v1 = vmul.f32 %v1528_v49, %v431_v60  ;;  %v689_v12 = vmul.f32 %v1528_v49, %v410_v59 }
  0xd7   : > { %1001 = vst [vmem:[%s1537_s15] sm:$0xff] %v1000_v58   ;;  %627 = vadd.xlane.f32.xlu0 %v571_v57  ;;  %v556_v18 = vmul.f32 %v1523_v48, %v410_v59 }
  0xd8   : > { %1080 = vst [vmem:[%s1537_s15 + $0x20] sm:$0xff] %v1020_v61   ;;  %611 = vadd.xlane.f32.xlu1 %v563_v62  ;;  %712 = vadd.xlane.f32.xlu2 %v680_v63 }
  0xdb   : > { %v458_v0 = vpop.f32.mrf.mxu3 }
  0xdc   : > { %v1060_v2 = vpack.c.bf16 %v458_v0, %v455_v55  ;;  %v572_v3 = vmul.f32 %v1523_v48, %v458_v0  ;;  %v389_v4 = vpop.f32.mrf.mxu0  ;;  %v705_v31 = vmul.f32 %v1528_v49, %v458_v0 }
  0xdd   : > { %v434_v5 = vpop.f32.mrf.mxu2  ;;  %v413_v6 = vpop.f32.mrf.mxu1  ;;  %v549_v21 = vmul.f32 %v1523_v48, %v389_v4  ;;  %v682_v32 = vmul.f32 %v1528_v49, %v389_v4 }
  0xde   : > { %1088 = vst [vmem:[%s1537_s15 + $0x60] sm:$0xff] %v1060_v2   ;;  %v1040_v7 = vpack.c.bf16 %v434_v5, %v431_v60  ;;  %v697_v11 = vmul.f32 %v1528_v49, %v434_v5  ;;  %v564_v20 = vmul.f32 %v1523_v48, %v434_v5  ;;  %v557_v26 = vmul.f32 %v1523_v48, %v413_v6 }
  0xdf   : > { %744 = vadd.xlane.f32.xlu0 %v696_v1  ;;  %v690_v39 = vmul.f32 %v1528_v49, %v413_v6 }
  0xe0   : > { %1084 = vst [vmem:[%s1537_s15 + $0x40] sm:$0xff] %v1040_v7   ;;  %629 = vadd.xlane.f32.xlu1 %v572_v3  ;;  %760 = vadd.xlane.f32.xlu2 %v704_v8 }
  0xe3   : > { %v461_v10 = vpop.f32.mrf.mxu3 }
  0xe4   : > { %v392_v13 = vpop.f32.mrf.mxu0  ;;  %v573_v25 = vmul.f32 %v1523_v48, %v461_v10  ;;  %v706_v40 = vmul.f32 %v1528_v49, %v461_v10 }
  0xe5   : > { %v1005_v14 = vpack.c.bf16 %v392_v13, %v389_v4  ;;  %v416_v15 = vpop.f32.mrf.mxu1  ;;  %v437_v16 = vpop.f32.mrf.mxu2  ;;  %v683_v44 = vmul.f32 %v1528_v49, %v392_v13  ;;  %v550_v45 = vmul.f32 %v1523_v48, %v392_v13 }
  0xe6   : > { %v1025_v17 = vpack.c.bf16 %v416_v15, %v413_v6  ;;  %v698_v30 = vmul.f32 %v1528_v49, %v437_v16  ;;  %v558_v38 = vmul.f32 %v1523_v48, %v416_v15  ;;  %v565_v46 = vmul.f32 %v1523_v48, %v437_v16 }
  0xe7   : > { %581 = vadd.xlane.f32.xlu0 %v548_v9  ;;  %1077 = vst [vmem:[%s1537_s15 + $0x8] sm:$0xff] %v1005_v14   ;;  %v691_v53 = vmul.f32 %v1528_v49, %v416_v15 }
  0xe8   : > { %746 = vadd.xlane.f32.xlu1 %v697_v11  ;;  %730 = vadd.xlane.f32.xlu2 %v689_v12  ;;  %1081 = vst [vmem:[%s1537_s15 + $0x28] sm:$0xff] %v1025_v17  }
  0xeb   : > { %v464_v19 = vpop.f32.mrf.mxu3 }
  0xec   : > { %v1065_v22 = vpack.c.bf16 %v464_v19, %v461_v10  ;;  %v395_v28 = vpop.f32.mrf.mxu0  ;;  %v574_v51 = vmul.f32 %v1523_v48, %v464_v19  ;;  %v707_v52 = vmul.f32 %v1528_v49, %v464_v19 }
  0xed   : > { %v440_v23 = vpop.f32.mrf.mxu2  ;;  %v419_v29 = vpop.f32.mrf.mxu1  ;;  %v551_v56 = vmul.f32 %v1523_v48, %v395_v28  ;;  %v684_v0 = vmul.f32 %v1528_v49, %v395_v28 }
  0xee   : > { %1089 = vst [vmem:[%s1537_s15 + $0x68] sm:$0xff] %v1065_v22   ;;  %v1045_v24 = vpack.c.bf16 %v440_v23, %v437_v16  ;;  %v699_v54 = vmul.f32 %v1528_v49, %v440_v23  ;;  %v566_v55 = vmul.f32 %v1523_v48, %v440_v23  ;;  %v559_v57 = vmul.f32 %v1523_v48, %v419_v29 }
  0xef   : > { %597 = vadd.xlane.f32.xlu0 %v556_v18  ;;  %v692_v59 = vmul.f32 %v1528_v49, %v419_v29 }
  0xf0   : > { %613 = vadd.xlane.f32.xlu2 %v564_v20  ;;  %583 = vadd.xlane.f32.xlu1 %v549_v21  ;;  %1085 = vst [vmem:[%s1537_s15 + $0x48] sm:$0xff] %v1045_v24  }
  0xf3   : > { %v467_v37 = vpop.f32.mrf.mxu3 }
  0xf4   : > { %v1562_v33 = vpop.f32.mrf.mxu0  ;;  %v575_v58 = vmul.f32 %v1523_v48, %v467_v37  ;;  %v708_v9 = vmul.f32 %v1528_v49, %v467_v37 }
  0xf5   : > { %v1564_v34 = vpop.f32.mrf.mxu1  ;;  %v1010_v35 = vpack.c.bf16 %v1562_v33, %v395_v28  ;;  %v443_v41 = vpop.f32.mrf.mxu2  ;;  %v552_v8 = vmul.f32 %v1523_v48, %v1562_v33  ;;  %v685_v15 = vmul.f32 %v1528_v49, %v1562_v33 }
  0xf6   : > { %v1030_v36 = vpack.c.bf16 %v1564_v34, %v419_v29  ;;  %v700_v62 = vmul.f32 %v1528_v49, %v443_v41  ;;  %v567_v63 = vmul.f32 %v1523_v48, %v443_v41  ;;  %v560_v7 = vmul.f32 %v1523_v48, %v1564_v34 }
  0xf7   : > { %714 = vadd.xlane.f32.xlu0 %v681_v27  ;;  %1078 = vst [vmem:[%s1537_s15 + $0x10] sm:$0xff] %v1010_v35   ;;  %v693_v14 = vmul.f32 %v1528_v49, %v1564_v34 }
  0xf8   : > { %631 = vadd.xlane.f32.xlu2 %v573_v25  ;;  %599 = vadd.xlane.f32.xlu1 %v557_v26  ;;  %1082 = vst [vmem:[%s1537_s15 + $0x30] sm:$0xff] %v1030_v36  }
  0xfb   : > { %v1573_v42 = vpop.f32.mrf.mxu3 }
  0xfc   : > { %v1070_v43 = vpack.c.bf16 %v1573_v42, %v467_v37  ;;  %v1593_v60 = vpop.f32.mrf.mxu0  ;;  %v576_v16 = vmul.f32 %v1523_v48, %v1573_v42 }
  0xfd   : > { %v1580_v47 = vpop.f32.mrf.mxu2  ;;  %v425_v61 = vpop.f32.mrf.mxu1  ;;  %v553_v26 = vmul.f32 %v1523_v48, %v1593_v60  ;;  %v686_v34 = vmul.f32 %v1528_v49, %v1593_v60 }
  0xfe   : > { %1090 = vst [vmem:[%s1537_s15 + $0x70] sm:$0xff] %v1070_v43   ;;  %v1050_v50 = vpack.c.bf16 %v1580_v47, %v443_v41  ;;  %v568_v20 = vmul.f32 %v1523_v48, %v1580_v47  ;;  %v694_v21 = vmul.f32 %v1528_v49, %v425_v61  ;;  %v701_v22 = vmul.f32 %v1528_v49, %v1580_v47 }
  0xff   : > { %762 = vadd.xlane.f32.xlu0 %v705_v31  ;;  %v561_v28 = vmul.f32 %v1523_v48, %v425_v61 }
 0x100   : > { %748 = vadd.xlane.f32.xlu2 %v698_v30  ;;  %716 = vadd.xlane.f32.xlu1 %v682_v32  ;;  %1086 = vst [vmem:[%s1537_s15 + $0x50] sm:$0xff] %v1050_v50  }
 0x103   : > { %v1607_v6 = vpop.f32.mrf.mxu3 }
 0x104   : > { %v1598_v1 = vpop.f32.mrf.mxu0  ;;  %v577_v32 = vmul.f32 %v1523_v48, %v1607_v6 }
 0x105   : > { %v1600_v2 = vpop.f32.mrf.mxu1  ;;  %v1015_v3 = vpack.c.bf16 %v1598_v1, %v1593_v60  ;;  %v1605_v5 = vpop.f32.mrf.mxu2  ;;  %v554_v33 = vmul.f32 %v1523_v48, %v1598_v1 }
 0x106   : > { %v1035_v4 = vpack.c.bf16 %v1600_v2, %v425_v61  ;;  %v569_v27 = vmul.f32 %v1523_v48, %v1605_v5 }
 0x107   : > { %732 = vadd.xlane.f32.xlu0 %v690_v39  ;;  %1079 = vst [vmem:[%s1537_s15 + $0x18] sm:$0xff] %v1015_v3  }
 0x108   : > { %601 = vadd.xlane.f32.xlu2 %v558_v38  ;;  %764 = vadd.xlane.f32.xlu1 %v706_v40  ;;  %1083 = vst [vmem:[%s1537_s15 + $0x38] sm:$0xff] %v1035_v4   ;;  %v695_v38 = vmul.f32 %v1528_v49, %v1600_v2  ;;  %v702_v40 = vmul.f32 %v1528_v49, %v1605_v5 }
 0x10b   : > { %v1619_v11 = vpop.f32.mrf.mxu3 }
 0x10c   : > { %v1075_v13 = vpack.c.bf16 %v1619_v11, %v1607_v6  ;;  %v578_v39 = vmul.f32 %v1523_v48, %v1619_v11 }
 0x10d   : > { %v1617_v10 = vpop.f32.mrf.mxu2 }
 0x10e   : > { %v1055_v12 = vpack.c.bf16 %v1617_v10, %v1605_v5  ;;  %1091 = vst [vmem:[%s1537_s15 + $0x78] sm:$0xff] %v1075_v13   ;;  %v703_v47 = vmul.f32 %v1528_v49, %v1617_v10 }
 0x10f   : > { %615 = vadd.xlane.f32.xlu0 %v565_v46  ;;  %v570_v46 = vmul.f32 %v1523_v48, %v1617_v10 }
 0x110   : > { %718 = vadd.xlane.f32.xlu2 %v683_v44  ;;  %585 = vadd.xlane.f32.xlu1 %v550_v45  ;;  %1087 = vst [vmem:[%s1537_s15 + $0x58] sm:$0xff] %v1055_v12   ;;  %v562_v45 = vmul.f32 %v1523_v48, %v1600_v2  ;;  %s1279_s15 = scalar_lea.hbm %s1278_s29, 128 }
 0x111   : > { %p1280_p4 = scmp.ne.s32.totalorder %s1278_s29, %s1279_s15  ;;  %p1285_p2 = scmp.lt.s32.totalorder %s1283_s12, %s1279_s15 }
 0x113   : > { %p1281_p8 = pnand %p1280_p4, %p1444_p3  ;;  %p1286_p10 = por %p1285_p2, %p1284_p9 }
 0x115   : > { %p1282_p11 = pneg %p1281_p8 }
 0x117   : > { %633 = vadd.xlane.f32.xlu0 %v574_v51  ;;  %p1287_p12 = pnand %p1286_p10, %p1282_p11 }
 0x118   : > { %766 = vadd.xlane.f32.xlu2 %v707_v52  ;;  %734 = vadd.xlane.f32.xlu1 %v691_v53  ;;  %v687_v52 = vmul.f32 %v1528_v49, %v1598_v1  ;;  %v710_v53 = vmul.f32 %v1528_v49, %v1607_v6 }
 0x11f   : > { %750 = vadd.xlane.f32.xlu0 %v699_v54  ;;  %v709_v54 = vmul.f32 %v1528_v49, %v1573_v42 }
 0x120   : > { %617 = vadd.xlane.f32.xlu1 %v566_v55  ;;  %587 = vadd.xlane.f32.xlu2 %v551_v56 }
 0x127   : > { %603 = vadd.xlane.f32.xlu0 %v559_v57 }
 0x128   : > { %635 = vadd.xlane.f32.xlu1 %v575_v58  ;;  %736 = vadd.xlane.f32.xlu2 %v692_v59 }
 0x12f   : > { %720 = vadd.xlane.f32.xlu0 %v684_v0 }
 0x130   : > { %752 = vadd.xlane.f32.xlu1 %v700_v62  ;;  %619 = vadd.xlane.f32.xlu2 %v567_v63 }
 0x137   : > { %768 = vadd.xlane.f32.xlu0 %v708_v9 }
 0x138   : > { %605 = vadd.xlane.f32.xlu1 %v560_v7  ;;  %589 = vadd.xlane.f32.xlu2 %v552_v8 }
 0x13f   : > { %738 = vadd.xlane.f32.xlu0 %v693_v14 }
 0x140   : > { %722 = vadd.xlane.f32.xlu1 %v685_v15  ;;  %637 = vadd.xlane.f32.xlu2 %v576_v16 }
 0x142   : > { %v580_v17 = vpop.xlane.xlu0 %579 }
 0x143   : > { %v729_v18 = vpop.xlane.xlu1 %728  ;;  %v596_v19 = vpop.xlane.xlu2 %595  ;;  %644 = vst.msk [vmem:[%s1636_s9] sm:$0xff] %vm643_vm0, %v580_v17 }
 0x144   : > { %784 = vst.msk [vmem:[%s1641_s26 + $0x40] sm:$0xff] %vm643_vm0, %v729_v18 }
 0x145   : > { %652 = vst.msk [vmem:[%s1636_s9 + $0x40] sm:$0xff] %vm643_vm0, %v596_v19 }
 0x147   : > { %621 = vadd.xlane.f32.xlu0 %v568_v20 }
 0x148   : > { %740 = vadd.xlane.f32.xlu1 %v694_v21  ;;  %754 = vadd.xlane.f32.xlu2 %v701_v22 }
 0x14a   : > { %v628_v23 = vpop.xlane.xlu0 %627 }
 0x14b   : > { %v612_v24 = vpop.xlane.xlu1 %611  ;;  %v713_v25 = vpop.xlane.xlu2 %712  ;;  %668 = vst.msk [vmem:[%s1636_s9 + $0xc0] sm:$0xff] %vm643_vm0, %v628_v23 }
 0x14c   : > { %660 = vst.msk [vmem:[%s1636_s9 + $0x80] sm:$0xff] %vm643_vm0, %v612_v24 }
 0x14d   : > { %776 = vst.msk [vmem:[%s1641_s26] sm:$0xff] %vm643_vm0, %v713_v25 }
 0x14f   : > { %591 = vadd.xlane.f32.xlu0 %v553_v26 }
 0x150   : > { %623 = vadd.xlane.f32.xlu1 %v569_v27  ;;  %607 = vadd.xlane.f32.xlu2 %v561_v28 }
 0x152   : > { %v745_v29 = vpop.xlane.xlu0 %744 }
 0x153   : > { %v630_v30 = vpop.xlane.xlu1 %629  ;;  %v761_v31 = vpop.xlane.xlu2 %760  ;;  %792 = vst.msk [vmem:[%s1641_s26 + $0x80] sm:$0xff] %vm643_vm0, %v745_v29 }
 0x154   : > { %669 = vst.msk [vmem:[%s1636_s9 + $0xc8] sm:$0xff] %vm643_vm0, %v630_v30 }
 0x155   : > { %800 = vst.msk [vmem:[%s1641_s26 + $0xc0] sm:$0xff] %vm643_vm0, %v761_v31 }
 0x157   : > { %639 = vadd.xlane.f32.xlu0 %v577_v32 }
 0x158   : > { %724 = vadd.xlane.f32.xlu2 %v686_v34  ;;  %593 = vadd.xlane.f32.xlu1 %v554_v33 }
 0x15a   : > { %v582_v35 = vpop.xlane.xlu0 %581 }
 0x15b   : > { %v747_v36 = vpop.xlane.xlu1 %746  ;;  %v731_v37 = vpop.xlane.xlu2 %730  ;;  %645 = vst.msk [vmem:[%s1636_s9 + $0x8] sm:$0xff] %vm643_vm0, %v582_v35 }
 0x15c   : > { %793 = vst.msk [vmem:[%s1641_s26 + $0x88] sm:$0xff] %vm643_vm0, %v747_v36 }
 0x15d   : > { %785 = vst.msk [vmem:[%s1641_s26 + $0x48] sm:$0xff] %vm643_vm0, %v731_v37 }
 0x15f   : > { %756 = vadd.xlane.f32.xlu0 %v702_v40 }
 0x160   : > { %742 = vadd.xlane.f32.xlu2 %v695_v38  ;;  %641 = vadd.xlane.f32.xlu1 %v578_v39 }
 0x162   : > { %v598_v41 = vpop.xlane.xlu0 %597 }
 0x163   : > { %v614_v43 = vpop.xlane.xlu2 %613  ;;  %653 = vst.msk [vmem:[%s1636_s9 + $0x48] sm:$0xff] %vm643_vm0, %v598_v41  ;;  %v584_v44 = vpop.xlane.xlu1 %583 }
 0x164   : > { %661 = vst.msk [vmem:[%s1636_s9 + $0x88] sm:$0xff] %vm643_vm0, %v614_v43 }
 0x165   : > { %646 = vst.msk [vmem:[%s1636_s9 + $0x10] sm:$0xff] %vm643_vm0, %v584_v44 }
 0x167   : > { %609 = vadd.xlane.f32.xlu0 %v562_v45 }
 0x168   : > { %625 = vadd.xlane.f32.xlu2 %v570_v46  ;;  %758 = vadd.xlane.f32.xlu1 %v703_v47 }
 0x16a   : > { %v715_v50 = vpop.xlane.xlu0 %714 }
 0x16b   : > { %v632_v51 = vpop.xlane.xlu2 %631  ;;  %777 = vst.msk [vmem:[%s1641_s26 + $0x8] sm:$0xff] %vm643_vm0, %v715_v50  ;;  %v600_v48 = vpop.xlane.xlu1 %599 }
 0x16c   : > { %670 = vst.msk [vmem:[%s1636_s9 + $0xd0] sm:$0xff] %vm643_vm0, %v632_v51 }
 0x16d   : > { %654 = vst.msk [vmem:[%s1636_s9 + $0x50] sm:$0xff] %vm643_vm0, %v600_v48 }
 0x16f   : > { %726 = vadd.xlane.f32.xlu0 %v687_v52 }
 0x170   : > { %1290 = shalt.err (!%p1287_p12)
}
 0x171   : > { %s1338_s19 = smov 64   ;;  %s1339_s8 = smov 4   ;;  %772 = vadd.xlane.f32.xlu2 %v710_v53  ;;  %770 = vadd.xlane.f32.xlu1 %v709_v54  ;;  %v711_v57 = vmul.f32 %v1528_v49, %v1619_v11 }
 0x172   : > { %1146 = dma.vmem_to_hbm [thread:$0]  (%p1444_p3), %s832_s14, 2048, %s834_s20, %s809_s25, %s1338_s19, %s1338_s19, %s1339_s8   ;;  %v763_v42 = vpop.xlane.xlu0 %762 }
 0x173   : > { %v749_v55 = vpop.xlane.xlu2 %748  ;;  %801 = vst.msk [vmem:[%s1641_s26 + $0xc8] sm:$0xff] %vm643_vm0, %v763_v42  ;;  %v717_v56 = vpop.xlane.xlu1 %716 }
 0x174   : > { %794 = vst.msk [vmem:[%s1641_s26 + $0x90] sm:$0xff] %vm643_vm0, %v749_v55 }
 0x175   : > { %778 = vst.msk [vmem:[%s1641_s26 + $0x10] sm:$0xff] %vm643_vm0, %v717_v56 }
 0x177   : > { %774 = vadd.xlane.f32.xlu0 %v711_v57 }
 0x17a   : > { %v733_v58 = vpop.xlane.xlu0 %732 }
 0x17b   : > { %v602_v59 = vpop.xlane.xlu2 %601  ;;  %786 = vst.msk [vmem:[%s1641_s26 + $0x50] sm:$0xff] %vm643_vm0, %v733_v58  ;;  %v765_v60 = vpop.xlane.xlu1 %764 }
 0x17c   : > { %655 = vst.msk [vmem:[%s1636_s9 + $0x58] sm:$0xff] %vm643_vm0, %v602_v59 }
 0x17d   : > { %802 = vst.msk [vmem:[%s1641_s26 + $0xd0] sm:$0xff] %vm643_vm0, %v765_v60 }
 0x182   : > { %v616_v61 = vpop.xlane.xlu0 %615 }
 0x183   : > { %662 = vst.msk [vmem:[%s1636_s9 + $0x90] sm:$0xff] %vm643_vm0, %v616_v61  ;;  %v719_v62 = vpop.xlane.xlu2 %718  ;;  %v586_v49 = vpop.xlane.xlu1 %585 }
 0x184   : > { %779 = vst.msk [vmem:[%s1641_s26 + $0x18] sm:$0xff] %vm643_vm0, %v719_v62 }
 0x185   : > { %647 = vst.msk [vmem:[%s1636_s9 + $0x18] sm:$0xff] %vm643_vm0, %v586_v49 }
 0x18a   : > { %v634_v63 = vpop.xlane.xlu0 %633 }
 0x18b   : > { %671 = vst.msk [vmem:[%s1636_s9 + $0xd8] sm:$0xff] %vm643_vm0, %v634_v63  ;;  %v767_v0 = vpop.xlane.xlu2 %766  ;;  %v735_v1 = vpop.xlane.xlu1 %734 }
 0x18c   : > { %803 = vst.msk [vmem:[%s1641_s26 + $0xd8] sm:$0xff] %vm643_vm0, %v767_v0 }
 0x18d   : > { %787 = vst.msk [vmem:[%s1641_s26 + $0x58] sm:$0xff] %vm643_vm0, %v735_v1 }
 0x192   : > { %v751_v2 = vpop.xlane.xlu0 %750 }
 0x193   : > { %795 = vst.msk [vmem:[%s1641_s26 + $0x98] sm:$0xff] %vm643_vm0, %v751_v2  ;;  %v618_v3 = vpop.xlane.xlu1 %617  ;;  %v588_v4 = vpop.xlane.xlu2 %587 }
 0x194   : > { %663 = vst.msk [vmem:[%s1636_s9 + $0x98] sm:$0xff] %vm643_vm0, %v618_v3 }
 0x195   : > { %648 = vst.msk [vmem:[%s1636_s9 + $0x20] sm:$0xff] %vm643_vm0, %v588_v4 }
 0x19a   : > { %v604_v5 = vpop.xlane.xlu0 %603 }
 0x19b   : > { %656 = vst.msk [vmem:[%s1636_s9 + $0x60] sm:$0xff] %vm643_vm0, %v604_v5  ;;  %v636_v6 = vpop.xlane.xlu1 %635  ;;  %v737_v7 = vpop.xlane.xlu2 %736 }
 0x19c   : > { %672 = vst.msk [vmem:[%s1636_s9 + $0xe0] sm:$0xff] %vm643_vm0, %v636_v6 }
 0x19d   : > { %788 = vst.msk [vmem:[%s1641_s26 + $0x60] sm:$0xff] %vm643_vm0, %v737_v7 }
 0x1a2   : > { %v721_v8 = vpop.xlane.xlu0 %720 }
 0x1a3   : > { %v753_v9 = vpop.xlane.xlu1 %752  ;;  %780 = vst.msk [vmem:[%s1641_s26 + $0x20] sm:$0xff] %vm643_vm0, %v721_v8  ;;  %v620_v10 = vpop.xlane.xlu2 %619 }
 0x1a4   : > { %796 = vst.msk [vmem:[%s1641_s26 + $0xa0] sm:$0xff] %vm643_vm0, %v753_v9 }
 0x1a5   : > { %664 = vst.msk [vmem:[%s1636_s9 + $0xa0] sm:$0xff] %vm643_vm0, %v620_v10 }
 0x1aa   : > { %v769_v11 = vpop.xlane.xlu0 %768 }
 0x1ab   : > { %v606_v12 = vpop.xlane.xlu1 %605  ;;  %804 = vst.msk [vmem:[%s1641_s26 + $0xe0] sm:$0xff] %vm643_vm0, %v769_v11  ;;  %v590_v13 = vpop.xlane.xlu2 %589 }
 0x1ac   : > { %657 = vst.msk [vmem:[%s1636_s9 + $0x68] sm:$0xff] %vm643_vm0, %v606_v12 }
 0x1ad   : > { %649 = vst.msk [vmem:[%s1636_s9 + $0x28] sm:$0xff] %vm643_vm0, %v590_v13 }
 0x1b2   : > { %v739_v14 = vpop.xlane.xlu0 %738 }
 0x1b3   : > { %789 = vst.msk [vmem:[%s1641_s26 + $0x68] sm:$0xff] %vm643_vm0, %v739_v14  ;;  %v723_v15 = vpop.xlane.xlu1 %722  ;;  %v638_v16 = vpop.xlane.xlu2 %637 }
 0x1b4   : > { %781 = vst.msk [vmem:[%s1641_s26 + $0x28] sm:$0xff] %vm643_vm0, %v723_v15 }
 0x1b5   : > { %673 = vst.msk [vmem:[%s1636_s9 + $0xe8] sm:$0xff] %vm643_vm0, %v638_v16 }
 0x1ba   : > { %v622_v17 = vpop.xlane.xlu0 %621 }
 0x1bb   : > { %665 = vst.msk [vmem:[%s1636_s9 + $0xa8] sm:$0xff] %vm643_vm0, %v622_v17  ;;  %v741_v18 = vpop.xlane.xlu1 %740  ;;  %v755_v19 = vpop.xlane.xlu2 %754 }
 0x1bc   : > { %790 = vst.msk [vmem:[%s1641_s26 + $0x70] sm:$0xff] %vm643_vm0, %v741_v18 }
 0x1bd   : > { %797 = vst.msk [vmem:[%s1641_s26 + $0xa8] sm:$0xff] %vm643_vm0, %v755_v19 }
 0x1c2   : > { %v592_v20 = vpop.xlane.xlu0 %591 }
 0x1c3   : > { %v624_v21 = vpop.xlane.xlu1 %623  ;;  %v608_v22 = vpop.xlane.xlu2 %607  ;;  %650 = vst.msk [vmem:[%s1636_s9 + $0x30] sm:$0xff] %vm643_vm0, %v592_v20 }
 0x1c4   : > { %666 = vst.msk [vmem:[%s1636_s9 + $0xb0] sm:$0xff] %vm643_vm0, %v624_v21 }
 0x1c5   : > { %658 = vst.msk [vmem:[%s1636_s9 + $0x70] sm:$0xff] %vm643_vm0, %v608_v22 }
 0x1ca   : > { %v640_v23 = vpop.xlane.xlu0 %639 }
 0x1cb   : > { %v725_v24 = vpop.xlane.xlu2 %724  ;;  %674 = vst.msk [vmem:[%s1636_s9 + $0xf0] sm:$0xff] %vm643_vm0, %v640_v23  ;;  %v594_v25 = vpop.xlane.xlu1 %593 }
 0x1cc   : > { %782 = vst.msk [vmem:[%s1641_s26 + $0x30] sm:$0xff] %vm643_vm0, %v725_v24 }
 0x1cd   : > { %651 = vst.msk [vmem:[%s1636_s9 + $0x38] sm:$0xff] %vm643_vm0, %v594_v25 }
 0x1d2   : > { %v757_v26 = vpop.xlane.xlu0 %756 }
 0x1d3   : > { %v743_v27 = vpop.xlane.xlu2 %742  ;;  %798 = vst.msk [vmem:[%s1641_s26 + $0xb0] sm:$0xff] %vm643_vm0, %v757_v26  ;;  %v642_v28 = vpop.xlane.xlu1 %641 }
 0x1d4   : > { %791 = vst.msk [vmem:[%s1641_s26 + $0x78] sm:$0xff] %vm643_vm0, %v743_v27 }
 0x1d5   : > { %675 = vst.msk [vmem:[%s1636_s9 + $0xf8] sm:$0xff] %vm643_vm0, %v642_v28 }
 0x1da   : > { %v610_v29 = vpop.xlane.xlu0 %609 }
 0x1db   : > { %v626_v30 = vpop.xlane.xlu2 %625  ;;  %659 = vst.msk [vmem:[%s1636_s9 + $0x78] sm:$0xff] %vm643_vm0, %v610_v29  ;;  %v759_v31 = vpop.xlane.xlu1 %758 }
 0x1dc   : > { %667 = vst.msk [vmem:[%s1636_s9 + $0xb8] sm:$0xff] %vm643_vm0, %v626_v30 }
 0x1dd   : > { %799 = vst.msk [vmem:[%s1641_s26 + $0xb8] sm:$0xff] %vm643_vm0, %v759_v31 }
 0x1e2   : > { %v727_v32 = vpop.xlane.xlu0 %726 }
 0x1e3   : > { %783 = vst.msk [vmem:[%s1641_s26 + $0x38] sm:$0xff] %vm643_vm0, %v727_v32 }
 0x1e4   : > { %v773_v33 = vpop.xlane.xlu2 %772  ;;  %v771_v34 = vpop.xlane.xlu1 %770 }
 0x1e5   : > { %806 = vst.msk [vmem:[%s1641_s26 + $0xf0] sm:$0xff] %vm643_vm0, %v773_v33 }
 0x1e6   : > { %805 = vst.msk [vmem:[%s1641_s26 + $0xe8] sm:$0xff] %vm643_vm0, %v771_v34 }
 0x1ea   : > { %v775_v35 = vpop.xlane.xlu0 %774 }
 0x1eb   : > { %807 = vst.msk [vmem:[%s1641_s26 + $0xf8] sm:$0xff] %vm643_vm0, %v775_v35 }
 0x1ec PF: > { %s856_s17 = sand.u32 1, %s1321_s21   ;;  %p1857_p3 = scmp.ge.s32.totalorder %s1333_s24, 2 }
 0x1ed   : > { %s857_s9 = scalar_lea.sflag [#allocation4], %s856_s17 }
 0x1ee   : > { %p1157_p13 = pnand %p1857_p3, %p1410_p6 }
 0x1f0   : > { %p1158_p0 = pneg %p1157_p13 }
 0x1f2   : > { %1316 = dma.done.wait (%p1158_p0), %s857_s9, 2048  }
 0x1f3   : > { %1318 = vsyncadd (%p1158_p0), %s857_s9, 4294965248  ;;  %p21_p5 = scmp.ge.s32.totalorder %s1428_s11, 4   ;;  %s1858_s21 = smov %s1325_s22 }
 0x1f4   : > { %s1859_s22 = smov %s1329_s23  ;;  %s1860_s23 = smov %s1440_s16 }
 0x1f5   : > { %s1861_s24 = smov %s1428_s11  ;;  %23 = sbr.rel (!%p21_p5) target bundleno = 6 (0x6), region = 109 }
 0x1fa   :  { %879 = vsyncpa [#allocation3], 1 }
 0x1fb   :  { %881 = vsyncpa [#allocation3 + $0x1], 1 }
 0x1fc   :  { %882 = vsyncpa [#allocation6], 1 }
 0x1fd   :  { %883 = vsyncpa [#allocation4], 1 }
 0x1fe   :  { %885 = vsyncpa [#allocation4 + $0x1], 1 }

</bundles_post_ra>
